<compile_context>
chip_gen: v7x
topology: tpu7x:2x2x1
jax: 0.10.0
libtpu: 0.0.40
codegen_flags: <defaults>
</compile_context>

<pallas_src>
import functools

import jax
import jax.numpy as jnp
from jax.experimental import pallas as pl
from jax.experimental.pallas import tpu as pltpu


def _round_up(x, m):
    return ((x + m - 1) // m) * m


def _mlp_kernel(x_ref, w1_ref, b1_ref, w2_ref, b2_ref, w3_ref, b3_ref, o_ref):
    """Fused linear1 -> tanh -> linear2 -> tanh -> linear3 on one batch tile."""
    wdt = w1_ref.dtype  # MXU operand dtype (bf16 by default; f32 also works)

    x = x_ref[...].astype(wdt)
    h = jnp.dot(x, w1_ref[...], preferred_element_type=jnp.float32)
    h = jnp.tanh(h + b1_ref[...])                      # f32 bias add + tanh (EUP)

    h = jnp.dot(h.astype(wdt), w2_ref[...], preferred_element_type=jnp.float32)
    h = jnp.tanh(h + b2_ref[...])

    y = jnp.dot(h.astype(wdt), w3_ref[...], preferred_element_type=jnp.float32)
    o_ref[...] = (y + b3_ref[...]).astype(o_ref.dtype)


def _batch_map(i):     # pipelined per-step tiles (x, out)
    return (i, 0)


def _const_map(i):     # VMEM-resident blocks (weights, biases)
    return (0, 0)


@functools.partial(jax.jit, static_argnames=("out_shape", "tile_b"))
def matrix_net_forward(x, params, out_shape=(2, 2), tile_b=1024):
    """Runs the fused 3-layer MLP as one gridded Pallas kernel, then reshapes."""
    w1, b1, w2, b2, w3, b3 = params
    batch, input_dim = x.shape
    hidden_dim = w1.shape[1]
    output_dim = w3.shape[1]

    # Batch tile: as large as requested (multiple of 8 sublanes for f32 blocks),
    # but never larger than the (padded) batch itself.
    tb = min(_round_up(tile_b, 8), _round_up(batch, 8))
    padded = _round_up(batch, tb)
    if padded != batch:
        x = jnp.pad(x, ((0, padded - batch), (0, 0)))
    grid = (padded // tb,)

    # Advisory cost estimate for XLA's scheduler.
    nbytes = lambda a: a.size * a.dtype.itemsize
    param_bytes = sum(nbytes(p) for p in (w1, b1, w2, b2, w3, b3))
    flops = 2 * padded * (input_dim * hidden_dim
                          + hidden_dim * hidden_dim
                          + hidden_dim * output_dim)
    cost = pl.CostEstimate(
        flops=flops,
        transcendentals=2 * padded * hidden_dim,
        bytes_accessed=(padded * input_dim * x.dtype.itemsize
                        + param_bytes
                        + padded * output_dim * 4),
    )

    flat = pl.pallas_call(
        _mlp_kernel,
        out_shape=jax.ShapeDtypeStruct((padded, output_dim), jnp.float32),
        grid_spec=pltpu.PrefetchScalarGridSpec(
            num_scalar_prefetch=0,
            grid=grid,
            in_specs=[
                pl.BlockSpec((tb, input_dim), _batch_map),            # x tile
                pl.BlockSpec((input_dim, hidden_dim), _const_map),    # W1 resident
                pl.BlockSpec((1, hidden_dim), _const_map),            # b1
                pl.BlockSpec((hidden_dim, hidden_dim), _const_map),   # W2
                pl.BlockSpec((1, hidden_dim), _const_map),            # b2
                pl.BlockSpec((hidden_dim, output_dim), _const_map),   # W3
                pl.BlockSpec((1, output_dim), _const_map),            # b3
            ],
            out_specs=pl.BlockSpec((tb, output_dim), _batch_map),
        ),
        compiler_params=pltpu.CompilerParams(
            dimension_semantics=("parallel",),          # megacore shard on v7x
            vmem_limit_bytes=32 * 1024 * 1024,
        ),
        cost_estimate=cost,
    )(x, w1, b1, w2, b2, w3, b3)

    # .view(-1, *shape) equivalent (drop any zero-padded tail rows first).
    return flat[:batch].reshape(-1, *out_shape)


def _orthogonal(key, rows, cols):
    """Deterministic orthogonal init (matches torch.nn.init.orthogonal_ semantics)."""
    n, m = max(rows, cols), min(rows, cols)
    a = jax.random.normal(key, (n, m), dtype=jnp.float32)
    q, r = jnp.linalg.qr(a)
    d = jnp.diag(r)
    q = q * jnp.where(d >= 0, 1.0, -1.0)[None, :]   # sign fix (no zero from sign(0))
    if rows < cols:
        q = q.T
    return q[:rows, :cols]


def init_matrix_net_params(key, input_dim, hidden_dim, output_dim,
                           param_dtype=jnp.bfloat16):
    """Returns (w1, b1, w2, b2, w3, b3); weights stored as (in, out).

    Weights are kept in `param_dtype` (bf16 by default: native MXU dtype on
    v6e/v7x, halves weight DMA / resident VMEM); biases stay f32 since the
    bias add + tanh run in f32 on the VPU/EUP.
    """
    k1, k2, k3, kb1, kb2, kb3 = jax.random.split(key, 6)
    # torch Linear weight is (out, in); orthogonal_ acts on that shape.
    w1 = _orthogonal(k1, hidden_dim, input_dim).T.astype(param_dtype)
    w2 = _orthogonal(k2, hidden_dim, hidden_dim).T.astype(param_dtype)
    w3 = _orthogonal(k3, output_dim, hidden_dim).T.astype(param_dtype)
    # torch Linear bias default init: U(-1/sqrt(fan_in), 1/sqrt(fan_in))
    b1 = jax.random.uniform(kb1, (1, hidden_dim), jnp.float32,
                            -1.0 / jnp.sqrt(input_dim), 1.0 / jnp.sqrt(input_dim))
    b2 = jax.random.uniform(kb2, (1, hidden_dim), jnp.float32,
                            -1.0 / jnp.sqrt(hidden_dim), 1.0 / jnp.sqrt(hidden_dim))
    b3 = jax.random.uniform(kb3, (1, output_dim), jnp.float32,
                            -1.0 / jnp.sqrt(hidden_dim), 1.0 / jnp.sqrt(hidden_dim))
    return (w1, b1, w2, b2, w3, b3)


def _reference_forward(x, params, out_shape):
    """Pure-JAX reference mirroring the kernel's (narrow operand, f32 acc) math."""
    w1, b1, w2, b2, w3, b3 = params
    wdt = w1.dtype
    f32 = jnp.float32

    def dense(h, w, b):
        return jnp.dot(h.astype(wdt).astype(f32), w.astype(f32),
                       preferred_element_type=f32) + b

    h = jnp.tanh(dense(x, w1, b1))
    h = jnp.tanh(dense(h, w2, b2))
    y = dense(h, w3, b3)
    return y.reshape(-1, *out_shape)


if __name__ == "__main__":
    # MatrixNet(input_dim=8, hidden_dim=32, output_dim=4, shape=(2, 2))
    input_dim, hidden_dim, output_dim = 8, 32, 4
    mat_shape = (2, 2)

    key = jax.random.PRNGKey(0)
    kx, kp, kx2 = jax.random.split(key, 3)
    params = init_matrix_net_params(kp, input_dim, hidden_dim, output_dim)

    # Small batch: single grid step.
    batch = 8
    x = jax.random.normal(kx, (batch, input_dim), dtype=jnp.float32)
    out = jax.block_until_ready(matrix_net_forward(x, params, out_shape=mat_shape))
    ref = _reference_forward(x, params, mat_shape)
    assert out.shape == (batch, *mat_shape), out.shape
    assert jnp.allclose(out, ref, atol=1e-4, rtol=1e-4), \
        float(jnp.max(jnp.abs(out - ref)))

    # Larger, non-tile-divisible batch: exercises the batch grid, pipelining,
    # megacore-parallel axis and the zero-padded tail path (grid=2 @ tile 512).
    batch2 = 1000
    x2 = jax.random.normal(kx2, (batch2, input_dim), dtype=jnp.float32)
    out2 = jax.block_until_ready(
        matrix_net_forward(x2, params, out_shape=mat_shape, tile_b=512))
    ref2 = _reference_forward(x2, params, mat_shape)
    assert out2.shape == (batch2, *mat_shape), out2.shape
    assert jnp.allclose(out2, ref2, atol=1e-4, rtol=1e-4), \
        float(jnp.max(jnp.abs(out2 - ref2)))

    print("KERNEL_OK")
</pallas_src>

<mosaic_0001>
module attributes {stable_mosaic.version = 11 : i64} {
  func.func @_mlp_kernel(%arg0: i32, %arg1: memref<8x8xf32, #tpu.memory_space<vmem>>, %arg2: memref<8x32xbf16, #tpu.memory_space<vmem>>, %arg3: memref<1x32xf32, #tpu.memory_space<vmem>>, %arg4: memref<32x32xbf16, #tpu.memory_space<vmem>>, %arg5: memref<1x32xf32, #tpu.memory_space<vmem>>, %arg6: memref<32x4xbf16, #tpu.memory_space<vmem>>, %arg7: memref<1x4xf32, #tpu.memory_space<vmem>>, %arg8: memref<8x4xf32, #tpu.memory_space<vmem>>) attributes {dimension_semantics = [#tpu.dimension_semantics<parallel>], iteration_bounds = array<i64: 1>, scalar_prefetch = 0 : i64, scratch_operands = 0 : i64, tpu.core_type = #tpu.core_type<tc>, window_params = [{transform_indices = @transform_0, window_bounds = array<i64: 8, 8>}, {pipeline_mode = #tpu.pipeline_mode<synchronous>, transform_indices = @transform_1, window_bounds = array<i64: 8, 32>}, {pipeline_mode = #tpu.pipeline_mode<synchronous>, transform_indices = @transform_2, window_bounds = array<i64: 1, 32>}, {pipeline_mode = #tpu.pipeline_mode<synchronous>, transform_indices = @transform_3, window_bounds = array<i64: 32, 32>}, {pipeline_mode = #tpu.pipeline_mode<synchronous>, transform_indices = @transform_4, window_bounds = array<i64: 1, 32>}, {pipeline_mode = #tpu.pipeline_mode<synchronous>, transform_indices = @transform_5, window_bounds = array<i64: 32, 4>}, {pipeline_mode = #tpu.pipeline_mode<synchronous>, transform_indices = @transform_6, window_bounds = array<i64: 1, 4>}, {transform_indices = @transform_7, window_bounds = array<i64: 8, 4>}]} {
    %c0 = arith.constant 0 : index
    %c0_0 = arith.constant 0 : index
    %0 = vector.load %arg1[%c0, %c0_0] : memref<8x8xf32, #tpu.memory_space<vmem>>, vector<8x8xf32>
    %1 = arith.truncf %0 : vector<8x8xf32> to vector<8x8xbf16>
    %c0_1 = arith.constant 0 : index
    %c0_2 = arith.constant 0 : index
    %2 = vector.load %arg2[%c0_1, %c0_2] : memref<8x32xbf16, #tpu.memory_space<vmem>>, vector<8x32xbf16>
    %cst = arith.constant dense<0.000000e+00> : vector<8x32xf32>
    %3 = tpu.matmul %1, %2, %cst {dimension_numbers = #tpu.dot_dimension_numbers<[1], [0], [0], [1], [0, 0, 1, 1], [], []>} : vector<8x8xbf16>, vector<8x32xbf16>, vector<8x32xf32> -> vector<8x32xf32>
    %c0_3 = arith.constant 0 : index
    %c0_4 = arith.constant 0 : index
    %4 = vector.load %arg3[%c0_3, %c0_4] : memref<1x32xf32, #tpu.memory_space<vmem>>, vector<1x32xf32>
    %5 = vector.broadcast %4 : vector<1x32xf32> to vector<8x32xf32>
    %6 = arith.addf %3, %5 : vector<8x32xf32>
    %7 = math.tanh %6 : vector<8x32xf32>
    %8 = arith.truncf %7 : vector<8x32xf32> to vector<8x32xbf16>
    %c0_5 = arith.constant 0 : index
    %c0_6 = arith.constant 0 : index
    %9 = vector.load %arg4[%c0_5, %c0_6] : memref<32x32xbf16, #tpu.memory_space<vmem>>, vector<32x32xbf16>
    %cst_7 = arith.constant dense<0.000000e+00> : vector<8x32xf32>
    %10 = tpu.matmul %8, %9, %cst_7 {dimension_numbers = #tpu.dot_dimension_numbers<[1], [0], [0], [1], [0, 0, 1, 1], [], []>} : vector<8x32xbf16>, vector<32x32xbf16>, vector<8x32xf32> -> vector<8x32xf32>
    %c0_8 = arith.constant 0 : index
    %c0_9 = arith.constant 0 : index
    %11 = vector.load %arg5[%c0_8, %c0_9] : memref<1x32xf32, #tpu.memory_space<vmem>>, vector<1x32xf32>
    %12 = vector.broadcast %11 : vector<1x32xf32> to vector<8x32xf32>
    %13 = arith.addf %10, %12 : vector<8x32xf32>
    %14 = math.tanh %13 : vector<8x32xf32>
    %15 = arith.truncf %14 : vector<8x32xf32> to vector<8x32xbf16>
    %c0_10 = arith.constant 0 : index
    %c0_11 = arith.constant 0 : index
    %16 = vector.load %arg6[%c0_10, %c0_11] : memref<32x4xbf16, #tpu.memory_space<vmem>>, vector<32x4xbf16>
    %cst_12 = arith.constant dense<0.000000e+00> : vector<8x4xf32>
    %17 = tpu.matmul %15, %16, %cst_12 {dimension_numbers = #tpu.dot_dimension_numbers<[1], [0], [0], [1], [0, 0, 1, 1], [], []>} : vector<8x32xbf16>, vector<32x4xbf16>, vector<8x4xf32> -> vector<8x4xf32>
    %c0_13 = arith.constant 0 : index
    %c0_14 = arith.constant 0 : index
    %18 = vector.load %arg7[%c0_13, %c0_14] : memref<1x4xf32, #tpu.memory_space<vmem>>, vector<1x4xf32>
    %19 = vector.broadcast %18 : vector<1x4xf32> to vector<8x4xf32>
    %20 = arith.addf %17, %19 : vector<8x4xf32>
    %c0_15 = arith.constant 0 : index
    %c0_16 = arith.constant 0 : index
    %21 = vector.load %arg8[%c0_15, %c0_16] : memref<8x4xf32, #tpu.memory_space<vmem>>, vector<8x4xf32>
    tpu.vector_store %arg8[%c0_15, %c0_16], %20 {strides = array<i32>} : memref<8x4xf32, #tpu.memory_space<vmem>>, vector<8x4xf32>,
    return
  }
  func.func @transform_0(%arg0: i32) -> (i32, i32) {
    %c0_i32 = arith.constant 0 : i32
    %c0_i32_0 = arith.constant 0 : i32
    return %arg0, %c0_i32 : i32, i32
  }
  func.func @transform_1(%arg0: i32) -> (i32, i32) {
    %c0_i32 = arith.constant 0 : i32
    %c0_i32_0 = arith.constant 0 : i32
    %c0_i32_1 = arith.constant 0 : i32
    return %c0_i32, %c0_i32_0 : i32, i32
  }
  func.func @transform_2(%arg0: i32) -> (i32, i32) {
    %c0_i32 = arith.constant 0 : i32
    %c0_i32_0 = arith.constant 0 : i32
    %c0_i32_1 = arith.constant 0 : i32
    return %c0_i32, %c0_i32_0 : i32, i32
  }
  func.func @transform_3(%arg0: i32) -> (i32, i32) {
    %c0_i32 = arith.constant 0 : i32
    %c0_i32_0 = arith.constant 0 : i32
    %c0_i32_1 = arith.constant 0 : i32
    return %c0_i32, %c0_i32_0 : i32, i32
  }
  func.func @transform_4(%arg0: i32) -> (i32, i32) {
    %c0_i32 = arith.constant 0 : i32
    %c0_i32_0 = arith.constant 0 : i32
    %c0_i32_1 = arith.constant 0 : i32
    return %c0_i32, %c0_i32_0 : i32, i32
  }
  func.func @transform_5(%arg0: i32) -> (i32, i32) {
    %c0_i32 = arith.constant 0 : i32
    %c0_i32_0 = arith.constant 0 : i32
    %c0_i32_1 = arith.constant 0 : i32
    return %c0_i32, %c0_i32_0 : i32, i32
  }
  func.func @transform_6(%arg0: i32) -> (i32, i32) {
    %c0_i32 = arith.constant 0 : i32
    %c0_i32_0 = arith.constant 0 : i32
    %c0_i32_1 = arith.constant 0 : i32
    return %c0_i32, %c0_i32_0 : i32, i32
  }
  func.func @transform_7(%arg0: i32) -> (i32, i32) {
    %c0_i32 = arith.constant 0 : i32
    %c0_i32_0 = arith.constant 0 : i32
    return %arg0, %c0_i32 : i32, i32
  }
}

</mosaic_0001>

<bundles_post_ra>
// kernel: matrix_net_forward.1
= control target key start
LH: loop header
LB: loop body
LE: loop exit
PB: predicated region body
PF: predicated region fallthrough
CT: control target
= control target key end

     0   :  { %vm41_vm0 = vcmask 1043456   ;;  %v278_v0 = vmov 0.0   ;;  %vm279_vm1 = vmmov 0   ;;  %vm37_vm2 = vcmask 64512   ;;  %s352_s1 = inlined_call_operand.vmem [shape: bf16[8,32], index: 1, kind: input, shape index: {}]   ;;  %s353_s0 = inlined_call_operand.vmem [shape: f32[8,8], index: 0, kind: input, shape index: {}]   ;;  %s354_s3 = inlined_call_operand.vmem [shape: bf16[32,32], index: 3, kind: input, shape index: {}]   ;;  %s355_s2 = inlined_call_operand.vmem [shape: f32[1,32], index: 2, kind: input, shape index: {}]   ;;  %s356_s5 = inlined_call_operand.vmem [shape: bf16[32,4], index: 5, kind: input, shape index: {}]   ;;  %s357_s4 = inlined_call_operand.vmem [shape: f32[1,32], index: 4, kind: input, shape index: {}]   ;;  %s358_s6 = inlined_call_operand.vmem [shape: f32[1,4], index: 6, kind: input, shape index: {}]   ;;  %s359_s7 = inlined_call_operand.vmem [shape: f32[8,4], index: 7, kind: output, shape index: {}]  }
   0x1   :  { %246 = vmatprep.subr.bf16.mxu0 %v278_v0  ;;  %v29_v1 = vld [vmem:[%s352_s1] sm:$0xf]  ;;  %248 = vmatprep.mubr.msk.bf16.mxu0 %vm279_vm1, %v278_v0  ;;  %v271_v6 = vld [vmem:[%s354_s3 + $0x8] sm:$0xff]   ;;  %vm110_vm3 = vcmask 261120   ;;  %vm222_vm4 = vcmask 31744  }
   0x2   :  { %v27_v2 = vld [vmem:[%s353_s0] sm:$0xff]  ;;  %v43_v3 = vsel %vm41_vm0, %v29_v1, 0  ;;  %252 = vmatprep.subr.bf16.mxu1 %v278_v0  ;;  %256 = vmatprep.mubr.msk.bf16.mxu1 %vm279_vm1, %v278_v0  ;;  %v273_v16 = vld [vmem:[%s356_s5 + $0x8] sm:$0xff]  }
   0x3   :  { %v28_v4 = vpack.c.bf16 %v27_v2, %v27_v2  ;;  %247 = vmatpush3.bf16.msra.mxu0 %v43_v3  ;;  %v270_v5 = vld [vmem:[%s354_s3] sm:$0xff]  }
   0x4   :  { %260 = vmatprep.subr.bf16.mxu0 %v278_v0  ;;  %253 = vmatpush3.bf16.msra.mxu1 %v270_v5  ;;  %v228_v7 = vld [vmem:[%s355_s2] ss:$0 sm:$0xff] }
   0x5   :  { %254 = vmatprep.subr.bf16.mxu1 %v278_v0  ;;  %v272_v15 = vld [vmem:[%s356_s5] sm:$0xff]  }
   0x6   :  { %249 = vmatmul.mubr.msk.bf16.vlgmr.msra.gmra.mrb[0].mxu0 %vm37_vm2, %v28_v4  ;;  %v230_v17 = vld [vmem:[%s357_s4] ss:$0 sm:$0xff] }
   0x7   :  { %264 = vmatprep.mubr.msk.bf16.mxu0 %vm279_vm1, %v278_v0  ;;  %261 = vmatpush3.bf16.msra.mxu0 %v272_v15  ;;  %v234_v25 = vld [vmem:[%s358_s6] ss:$0 sm:$0xff] }
   0x8   :  { %255 = vmatpush3.bf16.msra.mxu1 %v271_v6  ;;  %262 = vmatprep.subr.bf16.mxu0 %v278_v0 }
   0xb   :  { %263 = vmatpush3.bf16.msra.mxu0 %v273_v16 }
  0xd9   :  { %v79_v8 = vpop.f32.mrb[0].mxu0 }
  0xda   :  { %v80_v9 = vadd.f32 %v228_v7, %v79_v8  ;;  %v250_v10 = vpop.f32.mrb[1].mxu0 }
  0xdb   :  { %v82_v11 = vpop.f32.mrb[2].mxu0 }
  0xdc   :  { %274 = vtanh.f32 %v80_v9  ;;  %v251_v12 = vpop.f32.mrb[3].mxu0 }
  0xe6   :  { %v275_v13 = vpop.eup %274 }
  0xe7   :  { %v86_v14 = vpack.c.bf16 %v275_v13, %v275_v13 }
  0xe9   :  { %257 = vmatmul.mubr.msk.bf16.vlgmr.msra.gmra.mrb[0].mxu1 %vm110_vm3, %v86_v14 }
 0x1bc   :  { %v148_v18 = vpop.f32.mrb[0].mxu1 }
 0x1bd   :  { %v149_v19 = vadd.f32 %v230_v17, %v148_v18  ;;  %v258_v20 = vpop.f32.mrb[1].mxu1 }
 0x1be   :  { %v151_v21 = vpop.f32.mrb[2].mxu1 }
 0x1bf   :  { %276 = vtanh.f32 %v149_v19  ;;  %v259_v22 = vpop.f32.mrb[3].mxu1 }
 0x1c9   :  { %v277_v23 = vpop.eup %276 }
 0x1ca   :  { %v155_v24 = vpack.c.bf16 %v277_v23, %v277_v23 }
 0x1cc   :  { %265 = vmatmul.mubr.msk.bf16.vlgmr.msra.gmra.mrb[4].mxu0 %vm110_vm3, %v155_v24 }
 0x29f   :  { %v216_v26 = vpop.f32.mrb[4].mxu0 }
 0x2a0   :  { %v217_v27 = vadd.f32 %v234_v25, %v216_v26  ;;  %v266_v28 = vpop.f32.mrb[5].mxu0 }
 0x2a1   :  { %v219_v29 = vpop.f32.mrb[6].mxu0 }
 0x2a2   :  { %223 = vst.msk [vmem:[%s359_s7] sm:$0xff] %vm222_vm4, %v217_v27  ;;  %v267_v30 = vpop.f32.mrb[7].mxu0 }

</bundles_post_ra>
